<compile_context>
chip_gen: v7x
topology: tpu7x:2x2x1
jax: 0.10.0
libtpu: 0.0.40
codegen_flags: <defaults>
</compile_context>

<pallas_src>
import functools
import math

import jax
import jax.numpy as jnp
from jax.experimental import pallas as pl
from jax.experimental.pallas import tpu as pltpu


def _ceil_to(v: int, m: int) -> int:
    return -(-v // m) * m


def _choose_group(F: int, two_n: int) -> int:
    """Pick g | F: g consecutive features form one super-row of M = g*2n lanes.

    Score is the (8,128) vreg/VMEM padding waste of an (S=F/g, M) tile; ties
    prefer larger g (longer contiguous stores)."""
    def waste(g: int) -> float:
        S, M = F // g, g * two_n
        return (_ceil_to(S, 8) * _ceil_to(M, 128)) / float(S * M)

    best_g, best_w = 1, waste(1)
    for g in range(2, F + 1):
        if F % g or g > 64 or g * two_n > 4096:
            continue
        w = waste(g)
        if w < best_w - 1e-9 or (abs(w - best_w) <= 1e-9 and g > best_g):
            best_g, best_w = g, w
    return best_g


def _vmem_limit_bytes() -> int:
    """Scoped VMEM limit sized from the real chip (v5e/v6e: 128 MiB, v7x: 64 MiB)."""
    try:
        cap = pltpu.get_tpu_info().vmem_capacity_bytes
    except Exception:
        cap = 64 * 1024 * 1024                    # unknown -> assume v7x-sized VMEM
    return 64 * 1024 * 1024 if cap >= 128 * 1024 * 1024 else 48 * 1024 * 1024


def _choose_batch_block(B: int, S: int, M: int, out_itemsize: int,
                        vmem_limit: int) -> int:
    """Batch rows per grid step: as large as the VMEM budget allows (amortizes
    ~0.35us/step), but capped at ceil(B/2) so the grid has >= 2 parallel steps
    (both v7x TensorCores get work)."""
    sp = _ceil_to(S, 8)
    mp = _ceil_to(M, 128)
    bytes_per_row = (
        2 * sp * mp * out_itemsize        # output tile, double-buffered
        + 2 * sp * 128 * 4                # x tile (lane dim g pads to 128), double-buffered
        + 3 * sp * mp * 4                 # headroom for in-kernel f32 temporaries
    )
    resident = 2 * (sp * mp * 4 + mp * 4)  # coefficients + phase
    budget = vmem_limit - resident - 8 * 1024 * 1024
    tb = max(1, min(B, budget // bytes_per_row))
    if B >= 2:
        tb = min(tb, -(-B // 2))          # ceil(B/2) -> grid of at least 2 steps
    return int(tb)


def _periodic_kernel(x_ref, c_ref, phase_ref, o_ref, *, two_n: int):
    # x_ref:     (tb, S, g)  g feature values per super-row
    # c_ref:     (1,  S, M)  2*pi*coefficients laid out [c|c] per feature (resident)
    # phase_ref: (1,  1, M)  0 on cos lanes, pi/2 on sin lanes (resident)
    # o_ref:     (tb, S, M)  lane-dense output super-rows, M = g*2n
    tb, S, g = x_ref.shape
    x = x_ref[...]
    # Broadcast each x value across its 2n-lane segment and assemble one
    # lane-dense (tb, S, M) value, so the multiply/subtract/cos and the store
    # all run on full-width vregs.  Exact f32 (no MXU / bf16 rounding).
    if g == 1:
        xb = jnp.broadcast_to(x, (tb, S, two_n))
    else:
        xb = jnp.concatenate(
            [jnp.broadcast_to(x[:, :, j:j + 1], (tb, S, two_n)) for j in range(g)],
            axis=-1)
    v = c_ref[...] * xb - phase_ref[...]
    o_ref[...] = jnp.cos(v).astype(o_ref.dtype)   # cos(t - pi/2) == sin(t)


def periodic_forward(x: jax.Array, coefficients: jax.Array,
                     *, out_dtype=jnp.float32) -> jax.Array:
    """Pallas implementation of Periodic.forward.

    x:            (B, F) float32
    coefficients: (F, n) float32
    returns:      (B, F, 2n) in `out_dtype` (f32 by default; bf16 halves HBM writes)
    """
    assert x.ndim == 2
    B, F = x.shape
    Fc, n = coefficients.shape
    assert Fc == F
    two_n = 2 * n

    g = _choose_group(F, two_n)
    S = F // g                      # super-rows per batch row
    M = g * two_n                   # stored minor (lane) dimension

    out_itemsize = jnp.dtype(out_dtype).itemsize
    vmem_limit = _vmem_limit_bytes()
    tb = _choose_batch_block(B, S, M, out_itemsize, vmem_limit)
    grid = (pl.cdiv(B, tb),)

    # Free reshape of x into the super-row layout; coefficients/phase are built
    # once at their resident (un-replicated) sizes.
    x3 = x.astype(jnp.float32).reshape(B, S, g)
    c2 = (2.0 * math.pi) * coefficients.astype(jnp.float32)       # (F, n)
    c_res = jnp.concatenate([c2, c2], axis=-1).reshape(1, S, M)    # (1, S, M)
    phase = jnp.tile(
        jnp.concatenate([jnp.zeros((n,), jnp.float32),
                         jnp.full((n,), 0.5 * math.pi, jnp.float32)]),
        (g,)).reshape(1, 1, M)                                     # (1, 1, M)

    out = pl.pallas_call(
        functools.partial(_periodic_kernel, two_n=two_n),
        out_shape=jax.ShapeDtypeStruct((B, S, M), out_dtype),
        grid_spec=pltpu.PrefetchScalarGridSpec(
            num_scalar_prefetch=0,
            grid=grid,
            in_specs=[
                pl.BlockSpec((tb, S, g), lambda i: (i, 0, 0)),
                # Constant index maps -> these stay resident across grid steps.
                pl.BlockSpec((1, S, M), lambda i: (0, 0, 0)),
                pl.BlockSpec((1, 1, M), lambda i: (0, 0, 0)),
            ],
            out_specs=pl.BlockSpec((tb, S, M), lambda i: (i, 0, 0)),
        ),
        compiler_params=pltpu.CompilerParams(
            dimension_semantics=("parallel",),
            vmem_limit_bytes=vmem_limit,
        ),
    )(x3, c_res, phase)

    # Free reshape: (B, S, g*2n) is exactly the contiguous layout of (B, F, 2n).
    return out.reshape(B, F, two_n)


def make_coefficients(n_features: int, n: int, sigma: float,
                      initialization: str = "log-linear") -> jax.Array:
    """Deterministic parameter init mirroring Periodic.__init__."""
    if initialization == "log-linear":
        coeff = sigma ** (jnp.arange(n, dtype=jnp.float32) / n)
        coeff = jnp.tile(coeff[None, :], (n_features, 1))
    else:
        assert initialization == "normal"
        coeff = sigma * jax.random.normal(
            jax.random.PRNGKey(42), (n_features, n), dtype=jnp.float32)
    return coeff


def _reference(x, coefficients):
    v = 2.0 * math.pi * coefficients[None] * x[..., None]
    return jnp.concatenate([jnp.cos(v), jnp.sin(v)], axis=-1)


if __name__ == "__main__":
    key = jax.random.PRNGKey(0)
    k1, k2 = jax.random.split(key)

    # Case 1: small n (2n < 128) -> grouped super-row path (g > 1, lane-dense stores).
    B, F, N = 2, 4, 16
    x = jax.random.normal(k1, (B, F), dtype=jnp.float32)
    coeff = make_coefficients(F, N, 0.1, "log-linear")
    out = jax.block_until_ready(periodic_forward(x, coeff))
    ref = _reference(x, coeff)
    assert out.shape == (B, F, 2 * N)
    assert jnp.allclose(out, ref, atol=2e-5, rtol=2e-5)

    # Case 2: 2n >= 128 -> simple path (g == 1), already lane-dense.
    B2, F2, N2 = 2, 4, 64
    x2 = jax.random.normal(k2, (B2, F2), dtype=jnp.float32)
    coeff2 = make_coefficients(F2, N2, 0.05, "log-linear")
    out2 = jax.block_until_ready(periodic_forward(x2, coeff2))
    assert out2.shape == (B2, F2, 2 * N2)
    assert jnp.allclose(out2, _reference(x2, coeff2), atol=2e-5, rtol=2e-5)

    # Case 3: optional bf16 store (math stays f32; halves HBM write bytes).
    out_bf16 = jax.block_until_ready(
        periodic_forward(x, coeff, out_dtype=jnp.bfloat16))
    assert out_bf16.dtype == jnp.bfloat16
    assert jnp.allclose(out_bf16.astype(jnp.float32), ref, atol=2e-2, rtol=2e-2)

    print("KERNEL_OK")
</pallas_src>

<mosaic_0001>
module attributes {stable_mosaic.version = 11 : i64} {
  func.func @_periodic_kernel(%arg0: i32, %arg1: memref<1x1x4xf32, #tpu.memory_space<vmem>>, %arg2: memref<1x1x128xf32, #tpu.memory_space<vmem>>, %arg3: memref<1x1x128xf32, #tpu.memory_space<vmem>>, %arg4: memref<1x1x128xf32, #tpu.memory_space<vmem>>) attributes {dimension_semantics = [#tpu.dimension_semantics<parallel>], iteration_bounds = array<i64: 2>, scalar_prefetch = 0 : i64, scratch_operands = 0 : i64, tpu.core_type = #tpu.core_type<tc>, window_params = [{transform_indices = @transform_0, window_bounds = array<i64: 1, 1, 4>}, {pipeline_mode = #tpu.pipeline_mode<synchronous>, transform_indices = @transform_1, window_bounds = array<i64: 1, 1, 128>}, {pipeline_mode = #tpu.pipeline_mode<synchronous>, transform_indices = @transform_2, window_bounds = array<i64: 1, 1, 128>}, {transform_indices = @transform_3, window_bounds = array<i64: 1, 1, 128>}]} {
    %c0 = arith.constant 0 : index
    %c0_0 = arith.constant 0 : index
    %c0_1 = arith.constant 0 : index
    %0 = vector.load %arg1[%c0, %c0_0, %c0_1] : memref<1x1x4xf32, #tpu.memory_space<vmem>>, vector<1x1x4xf32>
    %1 = vector.extract_strided_slice %0 {offsets = [0, 0, 0], sizes = [1, 1, 1], strides = [1, 1, 1]} : vector<1x1x4xf32> to vector<1x1x1xf32>
    %2 = vector.shape_cast %1 : vector<1x1x1xf32> to vector<1x1x1xf32>
    %3 = vector.broadcast %2 : vector<1x1x1xf32> to vector<1x1x32xf32>
    %4 = vector.extract_strided_slice %0 {offsets = [0, 0, 1], sizes = [1, 1, 1], strides = [1, 1, 1]} : vector<1x1x4xf32> to vector<1x1x1xf32>
    %5 = vector.shape_cast %4 : vector<1x1x1xf32> to vector<1x1x1xf32>
    %6 = vector.broadcast %5 : vector<1x1x1xf32> to vector<1x1x32xf32>
    %7 = vector.extract_strided_slice %0 {offsets = [0, 0, 2], sizes = [1, 1, 1], strides = [1, 1, 1]} : vector<1x1x4xf32> to vector<1x1x1xf32>
    %8 = vector.shape_cast %7 : vector<1x1x1xf32> to vector<1x1x1xf32>
    %9 = vector.broadcast %8 : vector<1x1x1xf32> to vector<1x1x32xf32>
    %10 = vector.extract_strided_slice %0 {offsets = [0, 0, 3], sizes = [1, 1, 1], strides = [1, 1, 1]} : vector<1x1x4xf32> to vector<1x1x1xf32>
    %11 = vector.shape_cast %10 : vector<1x1x1xf32> to vector<1x1x1xf32>
    %12 = vector.broadcast %11 : vector<1x1x1xf32> to vector<1x1x32xf32>
    %13 = tpu.concatenate %3, %6, %9, %12 in 2 : vector<1x1x32xf32>, vector<1x1x32xf32>, vector<1x1x32xf32>, vector<1x1x32xf32> -> vector<1x1x128xf32>
    %c0_2 = arith.constant 0 : index
    %c0_3 = arith.constant 0 : index
    %c0_4 = arith.constant 0 : index
    %14 = vector.load %arg2[%c0_2, %c0_3, %c0_4] : memref<1x1x128xf32, #tpu.memory_space<vmem>>, vector<1x1x128xf32>
    %15 = arith.mulf %14, %13 : vector<1x1x128xf32>
    %c0_5 = arith.constant 0 : index
    %c0_6 = arith.constant 0 : index
    %c0_7 = arith.constant 0 : index
    %16 = vector.load %arg3[%c0_5, %c0_6, %c0_7] : memref<1x1x128xf32, #tpu.memory_space<vmem>>, vector<1x1x128xf32>
    %17 = arith.subf %15, %16 : vector<1x1x128xf32>
    %18 = math.cos %17 : vector<1x1x128xf32>
    %c0_8 = arith.constant 0 : index
    %c0_9 = arith.constant 0 : index
    %c0_10 = arith.constant 0 : index
    %19 = vector.load %arg4[%c0_8, %c0_9, %c0_10] : memref<1x1x128xf32, #tpu.memory_space<vmem>>, vector<1x1x128xf32>
    tpu.vector_store %arg4[%c0_8, %c0_9, %c0_10], %18 {strides = array<i32>} : memref<1x1x128xf32, #tpu.memory_space<vmem>>, vector<1x1x128xf32>,
    return
  }
  func.func @transform_0(%arg0: i32) -> (i32, i32, i32) {
    %c0_i32 = arith.constant 0 : i32
    %c0_i32_0 = arith.constant 0 : i32
    %c0_i32_1 = arith.constant 0 : i32
    return %arg0, %c0_i32, %c0_i32_0 : i32, i32, i32
  }
  func.func @transform_1(%arg0: i32) -> (i32, i32, i32) {
    %c0_i32 = arith.constant 0 : i32
    %c0_i32_0 = arith.constant 0 : i32
    %c0_i32_1 = arith.constant 0 : i32
    %c0_i32_2 = arith.constant 0 : i32
    return %c0_i32, %c0_i32_0, %c0_i32_1 : i32, i32, i32
  }
  func.func @transform_2(%arg0: i32) -> (i32, i32, i32) {
    %c0_i32 = arith.constant 0 : i32
    %c0_i32_0 = arith.constant 0 : i32
    %c0_i32_1 = arith.constant 0 : i32
    %c0_i32_2 = arith.constant 0 : i32
    return %c0_i32, %c0_i32_0, %c0_i32_1 : i32, i32, i32
  }
  func.func @transform_3(%arg0: i32) -> (i32, i32, i32) {
    %c0_i32 = arith.constant 0 : i32
    %c0_i32_0 = arith.constant 0 : i32
    %c0_i32_1 = arith.constant 0 : i32
    return %arg0, %c0_i32, %c0_i32_0 : i32, i32, i32
  }
}

</mosaic_0001>

<bundles_post_ra>
// kernel: tpu_custom_call.1
= control target key start
LH: loop header
LB: loop body
LE: loop exit
PB: predicated region body
PF: predicated region fallthrough
CT: control target
= control target key end

     0   :  { %8 = vsyncpa [#allocation3], 0  ;;  %s806_s0 = inlined_call_operand.hbm [shape: f32[2,1,4], index: 0, kind: input, shape index: {}]   ;;  %s807_s1 = inlined_call_operand.vmem [shape: f32[1,1,128], index: 1, kind: input, shape index: {}]   ;;  %s808_s2 = inlined_call_operand.vmem [shape: f32[1,1,128], index: 2, kind: input, shape index: {}]   ;;  %s809_s3 = inlined_call_operand.hbm [shape: f32[2,1,128], index: 3, kind: output, shape index: {}]  }
   0x1   :  { %10 = vsyncpa [#allocation3 + $0x1], 0 }
   0x2   :  { %11 = vsyncpa [#allocation4], 0 }
   0x3   :  { %13 = vsyncpa [#allocation4 + $0x1], 0  ;;  %s617_s12 = smov 0   ;;  %s619_s13 = smov 0  }
   0x4   :  { %s621_s14 = smov 0   ;;  %s623_s15 = smov 0  }
   0x5 LB: > { %s638_s16 = sadd.s32 4294967295, %s583_s15   ;;  %s406_s17 = sadd.s32 4294967294, %s583_s15   ;;  %s583_s15 = sphi %s623_s15, %s824_s15   ;;  %s579_s14 = sphi %s621_s14, %s823_s14   ;;  %s575_s13 = sphi %s619_s13, %s822_s13   ;;  %s571_s12 = sphi %s617_s12, %s821_s12  }
   0x6   : > { %s642_s18 = sadd.s32 1, %s583_s15   ;;  %s26_s19 = sadd.s32 1, %s579_s14 }
   0x7   : > { %s23_s20 = ssub.s32 %s583_s15, %s642_s18  ;;  %p33_p0 = scmp.ne.s32.totalorder %s579_s14, %s575_s13 }
   0x8   : > { %p24_p1 = scmp.eq.s32.totalorder %s23_s20, 0  ;;  %p34_p2 = scmp.eq.s32.totalorder %s583_s15, 0 }
   0x9   : > { %p39_p3 = scmp.ne.s32.totalorder %s575_s13, %s571_s12  ;;  %p40_p4 = scmp.eq.s32.totalorder %s638_s16, 0 }
   0xa   : > { %s654_s21 = scalar_select %p24_p1, %s579_s14, %s26_s19  }
   0xb   : > { %p656_p5 = por %p34_p2, %p33_p0  ;;  %p660_p6 = por %p40_p4, %p39_p3 }
   0xc   : > { %p105_p7 = scmp.eq.s32.totalorder %s638_s16, 1  ;;  %p111_p8 = scmp.eq.s32.totalorder %s406_s17, 1 }
   0xd   : > { %p434_p10 = scmp.lt.s32.totalorder %s583_s15, 2  ;;  %s137_s26 = sand.u32 1, %s579_s14  }
   0xe   : > { %p667_p11 = por %p105_p7, %p33_p0  ;;  %p671_p12 = por %p111_p8, %p39_p3 }
   0xf   : > { %s409_s27 = sshll.u32 %s583_s15, 4  ;;  %s140_s4 = scalar_lea.vmem [#allocation2], %s137_s26 }
  0x10   : > { %s813_s24 = scalar_select %p667_p11, 1, 0 }
  0x11   : > { %s814_s25 = scalar_select %p671_p12, 1, 0 }
  0x12   : > { %s680_s30 = scalar_lea.hbm %s806_s0, %s409_s27  ;;  %s147_s5 = sshll.u32 %s140_s4, 4  ;;  %s682_s5 = int_to_ptr.vmem [resolvable:$true] %s147_s5 }
  0x13   : > { %p686_p13 = pnand %p434_p10, %p656_p5  ;;  %s138_s7 = scalar_lea.sflag [#allocation3], %s137_s26 }
  0x14   : > { %s487_s8 = scalar_lea.hbm %s680_s30, 16  ;;  %s492_s11 = scalar_lea.hbm %s806_s0, 32 }
  0x15   : > { %p488_p2 = scmp.ne.s32.totalorder %s680_s30, %s487_s8  ;;  %p489_p3 = pneg %p686_p13 }
  0x16   : > { %p493_p5 = scmp.lt.u32.totalorder %s680_s30, %s806_s0  ;;  %p494_p8 = scmp.lt.u32.totalorder %s492_s11, %s487_s8 }
  0x17   : > { %p490_p4 = pnand %p489_p3, %p488_p2  ;;  %p496_p9 = scmp.lt.u32.totalorder %s487_s8, %s680_s30 }
  0x18   : > { %p495_p10 = por %p494_p8, %p493_p5 }
  0x19   : > { %p491_p7 = pneg %p490_p4 }
  0x1a   : > { %p497_p0 = por %p496_p9, %p495_p10 }
  0x1c   : > { %p498_p1 = pnand %p497_p0, %p491_p7 }
  0x1e   : > { %501 = shalt.err (!%p498_p1)
}
  0x1f   : > { %s502_s20 = scalar_lea.vmem %s682_s5, 16  ;;  %s585_s22 = smov [#allocation2]  }
  0x20   : > { %p503_p2 = scmp.ne.s32.totalorder %s682_s5, %s502_s20  ;;  %s507_s26 = sshll.u32 %s585_s22, 4  ;;  %s508_s26 = int_to_ptr.vmem [resolvable:$false] %s507_s26 }
  0x21   : > { %s509_s27 = scalar_lea.vmem %s508_s26, 32  ;;  %p510_p11 = scmp.lt.s32.totalorder %s682_s5, %s508_s26 }
  0x22   : > { %p505_p4 = pnand %p503_p2, %p489_p3  ;;  %p511_p5 = scmp.lt.s32.totalorder %s509_s27, %s502_s20 }
  0x24   : > { %p506_p12 = pneg %p505_p4  ;;  %p512_p8 = por %p511_p5, %p510_p11 }
  0x26   : > { %p513_p9 = pnand %p512_p8, %p506_p12 }
  0x28   : > { %516 = shalt.err (!%p513_p9)
}
  0x29   : > { %429 = dma.hbm_to_vmem [thread:$0]  (!%p686_p13), %s680_s30, 16, %s682_s5, %s138_s7  }
  0x2a   : > { %p816_p0 = scmp.lt.s32.totalorder %s583_s15, 3  ;;  %p817_p1 = scmp.ge.s32.totalorder %s583_s15, 1 }
  0x2c   : > { %p153_p3 = pnand %p817_p1, %p816_p0 }
  0x2d   : > { %s722_s28 = sand.u32 (!%p153_p3), 1, %s575_s13  }
  0x2e   : > { %156 = sbr.rel (%p153_p3) target bundleno = 291 (0x123), region = 32  ;;  %s159_s29 = scalar_lea.sflag (!%p153_p3), [#allocation3], %s722_s28 }
  0x2f   : > { %s161_s4 = scalar_lea.vmem (!%p153_p3), [#allocation2], %s722_s28 }
  0x35   : > { %562 = dma.done.wait (%p660_p6), %s159_s29, 16  }
  0x36   : > { %564 = vsyncadd (%p660_p6), %s159_s29, 4294967280  ;;  %v586_v0 = vmov 0   ;;  %v587_v1 = vmov 2   ;;  %v182_v2 = vld [vmem:[%s161_s4] sm:$0x1]  ;;  %v588_v3 = vmov 1   ;;  %v188_v5 = vlaneseq }
  0x37   : > { %478 = vset.pattern.permute.xlu0 %v586_v0  ;;  %480 = vset.pattern.permute.xlu1 %v587_v1  ;;  %v589_v4 = vmov 3   ;;  %vm216_vm0 = vcmask 261120   ;;  %vm218_vm1 = vcmask 523264   ;;  %vm220_vm2 = vcmask 785408   ;;  %v222_v17 = vld [vmem:[%s807_s1] sm:$0x1] }
  0x38   : > { %185 = vperm.xlu0 %478, %v182_v2   ;;  %201 = vperm.xlu1 %480, %v182_v2   ;;  %v189_v6 = vshrl.u32 %v188_v5, 7  ;;  %v224_v19 = vld [vmem:[%s808_s2] sm:$0x1]  ;;  %v590_v34 = vmov 2102212464   ;;  %s415_s7 = sshll.u32 %s638_s16, 4 }
  0x39   : > { %v591_v36 = vmov 920167782   ;;  %v592_v40 = vmov 1326507024   ;;  %v593_v42 = vmov 683565275   ;;  %s762_s17 = scalar_lea.hbm %s809_s3, %s415_s7 }
  0x3a   : > { %v190_v9 = vsub.s32 0, %v189_v6  ;;  %v594_v44 = vmov 2475754826   ;;  %v595_v47 = vmov 2131351028   ;;  %s181_s8 = scalar_lea.vmem [#allocation5], %s722_s28 }
  0x3b   : > { %s343_s9 = sshll.u32 %s181_s8, 4  ;;  %s331_s16 = scalar_lea.sflag [#allocation4], %s722_s28  ;;  %s764_s9 = int_to_ptr.vmem [resolvable:$true] %s343_s9 }
  0x3c   : > { %479 = vset.pattern.permute.xlu0 %v588_v3  ;;  %481 = vset.pattern.permute.xlu1 %v589_v4  ;;  %s517_s19 = scalar_lea.vmem %s764_s9, 16  ;;  %p818_p11 = scmp.ne.s32.totalorder %s813_s24, 0 }
  0x3d   : > { %193 = vperm.xlu0 %479, %v182_v2   ;;  %209 = vperm.xlu1 %481, %v182_v2   ;;  %p518_p6 = scmp.ne.s32.totalorder %s764_s9, %s517_s19  ;;  %s596_s20 = smov [#allocation5]  }
  0x3e   : > { %s521_s22 = sshll.u32 %s596_s20, 4  ;;  %s522_s22 = int_to_ptr.vmem [resolvable:$false] %s521_s22 }
  0x3f   : > { %p519_p12 = pnand %p518_p6, %p818_p11  ;;  %s523_s26 = scalar_lea.vmem %s522_s22, 32 }
  0x40   : > { %p524_p7 = scmp.lt.s32.totalorder %s764_s9, %s522_s22  ;;  %p525_p10 = scmp.lt.s32.totalorder %s523_s26, %s517_s19 }
  0x41   : > { %482 = vset.pattern.permute.xlu0 %v589_v4  ;;  %p520_p13 = pneg %p519_p12 }
  0x42   : > { %p526_p2 = por %p525_p10, %p524_p7 }
  0x44   : > { %p527_p4 = pnand %p526_p2, %p520_p13 }
  0xb7   : > { %v186_v7 = vpop.permute.xlu0 %185  ;;  %v202_v8 = vpop.permute.xlu1 %201 }
  0xb8   : > { %v191_v12 = vrot.slane %v186_v7, %v190_v9  ;;  %v207_v15 = vrot.slane %v202_v8, %v190_v9 }
  0xbc   : > { %v194_v10 = vpop.permute.xlu0 %193  ;;  %v210_v11 = vpop.permute.xlu1 %209 }
  0xbd   : > { %v199_v13 = vrot.slane %v194_v10, %v190_v9  ;;  %v215_v14 = vrot.slane %v210_v11, %v190_v9 }
  0xbf   : > { %v217_v16 = vsel %vm216_vm0, %v191_v12, %v199_v13 }
  0xc0   : > { %v219_v18 = vsel %vm218_vm1, %v217_v16, %v207_v15 }
  0xc1   : > { %v221_v20 = vsel %vm220_vm2, %v219_v18, %v215_v14 }
  0xc2   : > { %v223_v21 = vmul.f32 %v222_v17, %v221_v20 }
  0xc4   : > { %v736_v22 = vsub.f32 %v223_v21, %v224_v19 }
  0xc6   : > { %v229_v23 = vand.u32 2139095040, %v736_v22  ;;  %v226_v24 = vand.u32 2147483647, %v736_v22  ;;  %vm228_vm10 = vcmp.lt.s32.totalorder %v736_v22, 0  ;;  %vm318_vm15 = vweird.f32 %v736_v22 }
  0xc8   : > { %v230_v25 = vshrl.u32 %v229_v23, 23  ;;  %v233_v27 = vand.u32 8388607, %v226_v24  ;;  %vm227_vm11 = vcmp.le.f32.partialorder %v226_v24, 0.7853982 }
  0xca   : > { %v411_v26 = vadd.s32 4294967169, %v230_v25  ;;  %v234_v30 = vor.u32 8388608, %v233_v27 }
  0xcc   : > { %v236_v28 = vadd.s32 1, %v411_v26  ;;  %v274_v38 = vshll.u32 %v234_v30, 8 }
  0xce   : > { %vm237_vm3 = vcmp.gt.s32.totalorder %v236_v28, 0 }
  0xcf   : > { %v238_v29 = vsel %vm237_vm3, %v236_v28, 0 }
  0xd0   : > { %v240_v31 = vand.u32 31, %v238_v29  ;;  %v239_v32 = vshrl.u32 %v238_v29, 5 }
  0xd2   : > { %v241_v33 = vsub.s32 32, %v240_v31  ;;  %v252_v35 = vshll.u32 %v590_v34, %v240_v31  ;;  %v255_v37 = vshll.u32 %v591_v36, %v240_v31  ;;  %v243_v43 = vshll.u32 %v593_v42, %v240_v31 }
  0xd3   : > { %v246_v46 = vshll.u32 %v594_v44, %v240_v31  ;;  %v249_v49 = vshll.u32 %v595_v47, %v240_v31  ;;  %vm261_vm4 = vcmp.lt.s32.totalorder %v239_v32, 4  ;;  %vm258_vm5 = vcmp.lt.s32.totalorder %v239_v32, 1 }
  0xd4   : > { %v253_v39 = vshrl.u32 %v591_v36, %v241_v33  ;;  %v256_v41 = vshrl.u32 %v592_v40, %v241_v33  ;;  %v244_v45 = vshrl.u32 %v594_v44, %v241_v33  ;;  %v247_v48 = vshrl.u32 %v595_v47, %v241_v33 }
  0xd5   : > { %v250_v50 = vshrl.u32 %v590_v34, %v241_v33  ;;  %v242_v54 = vshrl.u32 %v593_v42, %v241_v33  ;;  %vm259_vm6 = vcmp.lt.s32.totalorder %v239_v32, 2  ;;  %vm260_vm7 = vcmp.lt.s32.totalorder %v239_v32, 3 }
  0xd6   : > { %v254_v51 = vor.u32 %v253_v39, %v252_v35  ;;  %v257_v52 = vor.u32 %v256_v41, %v255_v37  ;;  %v245_v53 = vor.u32 %v244_v45, %v243_v43  ;;  %v248_v55 = vor.u32 %v247_v48, %v246_v46 }
  0xd7   : > { %v251_v56 = vor.u32 %v250_v50, %v249_v49 }
  0xd8   : > { %v267_v57 = vsel %vm261_vm4, %v254_v51, 920167782  ;;  %v271_v58 = vsel %vm261_vm4, %v257_v52, 1326507024  ;;  %v266_v60 = vsel %vm258_vm5, %v245_v53, %v248_v55  ;;  %v262_v63 = vsel %vm258_vm5, %v242_v54, %v245_v53 }
  0xd9   : > { %v263_v59 = vsel %vm261_vm4, %v251_v56, 2102212464  ;;  %v268_v61 = vsel %vm260_vm7, %v251_v56, %v267_v57  ;;  %v270_v62 = vsel %vm258_vm5, %v248_v55, %v251_v56  ;;  %v272_v2 = vsel %vm260_vm7, %v254_v51, %v271_v58 }
  0xda   : > { %v264_v0 = vsel %vm260_vm7, %v248_v55, %v263_v59  ;;  %v269_v1 = vsel %vm259_vm6, %v266_v60, %v268_v61  ;;  %v273_v3 = vsel %vm259_vm6, %v270_v62, %v272_v2 }
  0xdb   : > { %v742_v4 = vmul.u32.u64.low %v274_v38, %v269_v1  ;;  %v743_v5 = vmul.u32.u64.high %v274_v38, %v269_v1, %v742_v4  ;;  %v745_v6 = vmul.u32.u64.low %v274_v38, %v273_v3  ;;  %v746_v7 = vmul.u32.u64.high %v274_v38, %v273_v3, %v745_v6 }
  0xdc   : > { %v265_v8 = vsel %vm259_vm6, %v262_v63, %v264_v0 }
  0xdd   : > { %v284_v9 = vadd.s32 1, %v743_v5  ;;  %v281_v10 = vmul.u32 %v274_v38, %v265_v8  ;;  %vm283_vm8 = vc.u32 %v746_v7, %v742_v4  ;;  %v282_v23 = vadd.s32 %v742_v4, %v746_v7 }
  0xdf   : > { %v285_v11 = vsel %vm283_vm8, %v284_v9, %v743_v5 }
  0xe0   : > { %v286_v12 = vadd.s32 %v285_v11, %v281_v10 }
  0xe2   : > { %v287_v13 = vadd.s32 536870912, %v286_v12 }
  0xe4   : > { %v288_v14 = vshrl.u32 %v287_v13, 30 }
  0xe6   : > { %v289_v15 = vshll.u32 %v288_v14, 30  ;;  %v312_v38 = vsub.s32 4, %v288_v14 }
  0xe8   : > { %v290_v16 = vsub.s32 %v286_v12, %v289_v15  ;;  %v313_v40 = vsel %vm228_vm10, %v312_v38, %v288_v14 }
  0xe9   : > { %v315_v41 = vsel %vm227_vm11, 0, %v313_v40 }
  0xea   : > { %v292_v17 = vsub.s32 0, %v290_v16  ;;  %v319_v42 = vand.u32 3, %v315_v41 }
  0xec   : > { %v412_v18 = vmin.u32 %v292_v17, %v290_v16  ;;  %vm324_vm12 = vcmp.eq.s32.totalorder %v319_v42, 2  ;;  %vm321_vm13 = vcmp.eq.s32.totalorder %v319_v42, 0  ;;  %vm320_vm14 = vcmp.lt.s32.totalorder %v319_v42, 2 }
  0xee   : > { %v294_v19 = vclz %v412_v18 }
  0xf0   : > { %v413_v20 = vadd.s32 4294967294, %v294_v19 }
  0xf2   : > { %vm414_vm9 = vcmp.lt.s32.totalorder %v413_v20, 0 }
  0xf3   : > { %v297_v21 = vsel %vm414_vm9, 0, %v413_v20 }
  0xf4   : > { %v298_v25 = vsub.s32 32, %v297_v21  ;;  %v302_v26 = vsub.s32 4294967266, %v297_v21  ;;  %v299_v27 = vshll.u32 %v290_v16, %v297_v21 }
  0xf6   : > { %v300_v28 = vshrl.u32 %v282_v23, %v298_v25  ;;  %v303_v29 = vadd.s32 127, %v302_v26 }
  0xf8   : > { %v301_v30 = vor.u32 %v300_v28, %v299_v27  ;;  %v304_v31 = vshll.u32 %v303_v29, 23 }
  0xfa   : > { %v305_v32 = vor.u32 4788187, %v304_v31  ;;  %v308_v34 = vcvt.s32.f32 %v301_v30 }
  0xfc   : > { %v306_v33 = vand.u32 2147483647, %v305_v32 }
  0xfe   : > { %v309_v35 = vmul.f32 %v308_v34, %v306_v33 }
 0x100   : > { %v310_v36 = vxor.u32 2147483648, %v309_v35 }
 0x102   : > { %v311_v37 = vsel %vm228_vm10, %v310_v36, %v309_v35 }
 0x103   : > { %v314_v39 = vsel %vm227_vm11, %v736_v22, %v311_v37 }
 0x104   : > { %483 = vcosq.f32 %v314_v39 }
 0x105   : > { %485 = vsinq.f32 %v314_v39 }
 0x10e   : > { %v484_v43 = vpop.eup %483 }
 0x10f   : > { %v486_v44 = vpop.eup %485  ;;  %v325_v45 = vxor.u32 2147483648, %v484_v43 }
 0x110   : > { %v322_v46 = vxor.u32 2147483648, %v486_v44 }
 0x111   : > { %v326_v24 = vsel %vm324_vm12, %v325_v45, %v486_v44 }
 0x112   : > { %v323_v47 = vsel %vm321_vm13, %v484_v43, %v322_v46 }
 0x113   : > { %v327_v48 = vsel %vm320_vm14, %v323_v47, %v326_v24 }
 0x114   : > { %v328_v49 = vsel %vm318_vm15, nan, %v327_v48 }
 0x115   : > { %329 = vst [vmem:[%s181_s8] sm:$0x1] %v328_v49 }
 0x116   : > { %530 = shalt.err (!%p527_p4)
}
 0x117   : > { %s531_s27 = scalar_lea.hbm %s762_s17, 16  ;;  %s535_s4 = scalar_lea.hbm %s809_s3, 32 }
 0x118   : > { %p532_p5 = scmp.ne.s32.totalorder %s762_s17, %s531_s27  ;;  %p536_p0 = scmp.lt.u32.totalorder %s762_s17, %s809_s3 }
 0x119   : > { %p537_p1 = scmp.lt.u32.totalorder %s535_s4, %s531_s27  ;;  %p539_p6 = scmp.lt.u32.totalorder %s531_s27, %s762_s17 }
 0x11a   : > { %p533_p8 = pnand %p532_p5, %p818_p11 }
 0x11b   : > { %p538_p3 = por %p537_p1, %p536_p0 }
 0x11c   : > { %p534_p9 = pneg %p533_p8 }
 0x11d   : > { %p540_p12 = por %p539_p6, %p538_p3 }
 0x11f   : > { %p541_p13 = pnand %p540_p12, %p534_p9 }
 0x121   : > { %544 = shalt.err (!%p541_p13)
}
 0x122   : > { %424 = dma.vmem_to_hbm [thread:$0]  (%p818_p11), %s764_s9, 16, %s762_s17, %s331_s16  }
 0x123 PF: > { %s355_s5 = sand.u32 1, %s571_s12   ;;  %p819_p7 = scmp.ne.s32.totalorder %s814_s25, 0 }
 0x124   : > { %p820_p10 = scmp.ge.s32.totalorder %s583_s15, 2  ;;  %s356_s6 = scalar_lea.sflag [#allocation4], %s355_s5 }
 0x126   : > { %p431_p2 = pnand %p820_p10, %p819_p7 }
 0x128   : > { %566 = dma.done.wait (!%p431_p2), %s356_s6, 16  }
 0x129   : > { %568 = vsyncadd (!%p431_p2), %s356_s6, 4294967280  ;;  %p16_p4 = scmp.ge.s32.totalorder %s642_s18, 4   ;;  %s821_s12 = smov %s575_s13 }
 0x12a   : > { %s822_s13 = smov %s579_s14  ;;  %s823_s14 = smov %s654_s21 }
 0x12b   : > { %s824_s15 = smov %s642_s18  ;;  %18 = sbr.rel (!%p16_p4) target bundleno = 5 (0x5), region = 77 }
 0x132   :  { %360 = vsyncpa [#allocation3], 1 }
 0x133   :  { %362 = vsyncpa [#allocation3 + $0x1], 1 }
 0x134   :  { %363 = vsyncpa [#allocation4], 1 }
 0x135   :  { %365 = vsyncpa [#allocation4 + $0x1], 1 }

</bundles_post_ra>
